<compile_context>
chip_gen: v5e
topology: v5e:2x2
jax: 0.10.0
libtpu: 0.0.40
codegen_flags: <defaults>
</compile_context>

<pallas_src>
import functools
import math

import jax
import jax.numpy as jnp
from jax import lax
from jax.experimental import pallas as pl
from jax.experimental.pallas import tpu as pltpu


_VMEM_LIMIT = 64 * 1024 * 1024   # explicit scoped-VMEM ceiling (safe on v5e/v6e/v7x)


# ---------------------------------------------------------------------------
# Kernel 1: row-tiled linear layer  y = x @ w_t + b   (w_t pre-transposed)
# ---------------------------------------------------------------------------
def _linear_kernel(x_ref, wt_ref, b_ref, o_ref):
    acc = jnp.dot(x_ref[...], wt_ref[...], preferred_element_type=jnp.float32)
    o_ref[...] = (acc + b_ref[...]).astype(o_ref.dtype)


def linear_pallas(x, w_t, b, *, out_dtype, tm=512):
    """x: (M, K) bf16, w_t: (K, N_out) bf16 (pre-transposed), b: (N_out,) f32.

    Weight / bias block indices are constant, so they are fetched once and
    stay VMEM-resident across all row tiles.  When M % tm != 0 the padded
    tail rows of the last block compute garbage that Pallas clips on
    writeback (correct, slightly wasteful).
    """
    M, K = x.shape
    N_out = w_t.shape[1]
    tm = min(tm, M)
    grid = (pl.cdiv(M, tm),)
    return pl.pallas_call(
        _linear_kernel,
        out_shape=jax.ShapeDtypeStruct((M, N_out), out_dtype),
        grid=grid,
        in_specs=[
            pl.BlockSpec((tm, K), lambda i: (i, 0)),
            pl.BlockSpec((K, N_out), lambda i: (0, 0)),
            pl.BlockSpec((1, N_out), lambda i: (0, 0)),
        ],
        out_specs=pl.BlockSpec((tm, N_out), lambda i: (i, 0)),
        compiler_params=pltpu.CompilerParams(
            dimension_semantics=("parallel",),
            vmem_limit_bytes=_VMEM_LIMIT),
    )(x, w_t, b.reshape(1, N_out))


# ---------------------------------------------------------------------------
# Kernel 2: fused multi-head SDPA, one batch element x one q tile per step
#   qkv_ref: (L, 3, H, Dh)   (resident across q tiles of the same element)
#   o_ref:   (tq, 1, H*Dh)   lane-dense merged-head output slab
# ---------------------------------------------------------------------------
def _sdpa_kernel(qkv_ref, o_ref, *, tq):
    _L, _three, H, Dh = qkv_ref.shape
    q_start = pl.multiple_of(pl.program_id(1) * tq, tq)

    # Static unroll over heads: every matmul is a plain 2-D MXU op (no
    # batched-einsum canonicalization transposes); the f32 score tile is only
    # (tq, L) per head.  q is already pre-scaled by 1/sqrt(Dh) (folded into
    # the in-projection weights in the wrapper).
    for h in range(H):
        q = qkv_ref[pl.ds(q_start, tq), 0, h, :]          # (tq, Dh)
        k = qkv_ref[:, 1, h, :]                           # (L, Dh)
        v = qkv_ref[:, 2, h, :]                           # (L, Dh)

        s = lax.dot_general(q, k, (((1,), (1,)), ((), ())),
                            preferred_element_type=jnp.float32)   # (tq, L)
        s = s - jnp.max(s, axis=-1, keepdims=True)
        p = jnp.exp(s)
        l = jnp.sum(p, axis=-1, keepdims=True)                    # (tq, 1)

        o = jnp.dot(p.astype(v.dtype), v,
                    preferred_element_type=jnp.float32)           # (tq, Dh)
        # Normalize AFTER the PV matmul (Dh cols instead of L), via EUP vrcp.
        o = o * pl.reciprocal(l, approx=True)

        o_ref[:, 0, h * Dh:(h + 1) * Dh] = o.astype(o_ref.dtype)


def _pick_q_tile(L, cap=256):
    """Largest power-of-two tile <= cap that divides L (falls back to L)."""
    for t in (256, 128, 64, 32, 16, 8):
        if t <= cap and t <= L and L % t == 0:
            return t
    return L


def sdpa_pallas(qkv):
    """qkv: (L, N, 3, H, Dh) fused-projection output (q pre-scaled).

    Returns (L, N, 1, E); reshaping to (L*N, E) afterwards is free.
    """
    L, N, _, H, Dh = qkv.shape
    E = H * Dh
    tq = _pick_q_tile(L)
    n_qt = L // tq

    return pl.pallas_call(
        functools.partial(_sdpa_kernel, tq=tq),
        out_shape=jax.ShapeDtypeStruct((L, N, 1, E), qkv.dtype),
        grid=(N, n_qt),
        in_specs=[
            # Single DMA per batch element; the block index ignores the
            # q-tile axis so the (L, 3, H, Dh) slab stays VMEM-resident.
            pl.BlockSpec((L, None, 3, H, Dh), lambda n, qi: (0, n, 0, 0, 0)),
        ],
        out_specs=pl.BlockSpec((tq, None, 1, E), lambda n, qi: (qi, n, 0, 0)),
        compiler_params=pltpu.CompilerParams(
            dimension_semantics=("parallel", "parallel"),
            vmem_limit_bytes=_VMEM_LIMIT),
    )(qkv)


# ---------------------------------------------------------------------------
# Wrapper reproducing nn.MultiheadAttention(x, x, x)[0] forward semantics
# ---------------------------------------------------------------------------
def multihead_self_attention(x, in_proj_w, in_proj_b, out_proj_w, out_proj_b,
                             num_heads, *, compute_dtype=jnp.bfloat16):
    """x: (L, N, E).  in_proj_w: (3E, E), out_proj_w: (E, E) (PyTorch layout)."""
    L, N, E = x.shape
    H = num_heads
    Dh = E // H
    scale = 1.0 / math.sqrt(Dh)

    # Fold the 1/sqrt(Dh) softmax scale into the q rows of the in-projection
    # parameters (one-time, on parameters) -> zero in-kernel scaling work.
    scale_vec = jnp.concatenate([jnp.full((E,), scale, in_proj_w.dtype),
                                 jnp.ones((2 * E,), in_proj_w.dtype)])
    w_in_t = (in_proj_w * scale_vec[:, None]).T.astype(compute_dtype)   # (E, 3E)
    b_in = (in_proj_b * scale_vec).astype(jnp.float32)
    w_out_t = out_proj_w.T.astype(compute_dtype)                        # (E, E)
    b_out = out_proj_b.astype(jnp.float32)

    # --- fused qkv projection: (L*N, E) -> (L*N, 3E), bf16 in / bf16 out ---
    xb = x.astype(compute_dtype).reshape(L * N, E)
    qkv = linear_pallas(xb, w_in_t, b_in, out_dtype=compute_dtype)
    qkv = qkv.reshape(L, N, 3, H, Dh)            # free reshape, no transpose

    # --- attention (head split/merge folded into kernel indexing) ---
    o = sdpa_pallas(qkv)                         # (L, N, 1, E) bf16
    o = o.reshape(L * N, E)                      # free reshape, no transpose

    # --- output projection, cast back to the input dtype on the way out ---
    out = linear_pallas(o, w_out_t, b_out, out_dtype=x.dtype)   # (L*N, E)
    return out.reshape(L, N, E)


# ---------------------------------------------------------------------------
# Pure-JAX f32 reference (for correctness check)
# ---------------------------------------------------------------------------
def reference_mha(x, in_w, in_b, out_w, out_b, num_heads):
    L, N, E = x.shape
    H, Dh = num_heads, E // num_heads
    qkv = x.reshape(L * N, E) @ in_w.T + in_b
    q, k, v = jnp.split(qkv, 3, axis=-1)
    to_h = lambda t: t.reshape(L, N, H, Dh).transpose(1, 2, 0, 3).reshape(N * H, L, Dh)
    qh, kh, vh = to_h(q), to_h(k), to_h(v)
    s = jnp.einsum("bld,bmd->blm", qh, kh) / (Dh ** 0.5)
    p = jax.nn.softmax(s, axis=-1)
    oh = jnp.einsum("blm,bmd->bld", p, vh)
    o = oh.reshape(N, H, L, Dh).transpose(2, 0, 1, 3).reshape(L * N, E)
    return (o @ out_w.T + out_b).reshape(L, N, E)


if __name__ == "__main__":
    d_model, num_heads = 32, 4
    L, N = 8, 2  # seq_len, batch

    key = jax.random.PRNGKey(0)
    kx, kw1, kb1, kw2, kb2 = jax.random.split(key, 5)

    x = jax.random.normal(kx, (L, N, d_model), dtype=jnp.float32)

    # deterministic parameter init (shapes from nn.MultiheadAttention)
    in_proj_w = jax.random.normal(kw1, (3 * d_model, d_model), jnp.float32) * 0.1
    in_proj_b = jax.random.normal(kb1, (3 * d_model,), jnp.float32) * 0.1
    out_proj_w = jax.random.normal(kw2, (d_model, d_model), jnp.float32) * 0.1
    out_proj_b = jax.random.normal(kb2, (d_model,), jnp.float32) * 0.1

    out = multihead_self_attention(x, in_proj_w, in_proj_b,
                                   out_proj_w, out_proj_b, num_heads)
    out = jax.block_until_ready(out)

    ref = reference_mha(x, in_proj_w, in_proj_b, out_proj_w, out_proj_b,
                        num_heads)
    assert out.shape == (L, N, d_model)
    err = float(jnp.max(jnp.abs(out - ref)))
    # bf16 data path vs f32 reference -> loose-but-meaningful tolerance
    assert err < 2e-2, f"max abs error {err}"

    print("KERNEL_OK")
</pallas_src>

<mosaic_0001>
module attributes {stable_mosaic.version = 11 : i64} {
  func.func @_linear_kernel(%arg0: i32, %arg1: memref<16x32xbf16, #tpu.memory_space<vmem>>, %arg2: memref<32x96xbf16, #tpu.memory_space<vmem>>, %arg3: memref<1x96xf32, #tpu.memory_space<vmem>>, %arg4: memref<16x96xbf16, #tpu.memory_space<vmem>>) attributes {dimension_semantics = [#tpu.dimension_semantics<parallel>], iteration_bounds = array<i64: 1>, scalar_prefetch = 0 : i64, scratch_operands = 0 : i64, tpu.core_type = #tpu.core_type<tc>, window_params = [{transform_indices = @transform_0, window_bounds = array<i64: 16, 32>}, {pipeline_mode = #tpu.pipeline_mode<synchronous>, transform_indices = @transform_1, window_bounds = array<i64: 32, 96>}, {pipeline_mode = #tpu.pipeline_mode<synchronous>, transform_indices = @transform_2, window_bounds = array<i64: 1, 96>}, {transform_indices = @transform_3, window_bounds = array<i64: 16, 96>}]} {
    %c0 = arith.constant 0 : index
    %c0_0 = arith.constant 0 : index
    %0 = vector.load %arg1[%c0, %c0_0] : memref<16x32xbf16, #tpu.memory_space<vmem>>, vector<16x32xbf16>
    %c0_1 = arith.constant 0 : index
    %c0_2 = arith.constant 0 : index
    %1 = vector.load %arg2[%c0_1, %c0_2] : memref<32x96xbf16, #tpu.memory_space<vmem>>, vector<32x96xbf16>
    %cst = arith.constant dense<0.000000e+00> : vector<16x96xf32>
    %2 = tpu.matmul %0, %1, %cst {dimension_numbers = #tpu.dot_dimension_numbers<[1], [0], [0], [1], [0, 0, 1, 1], [], []>} : vector<16x32xbf16>, vector<32x96xbf16>, vector<16x96xf32> -> vector<16x96xf32>
    %c0_3 = arith.constant 0 : index
    %c0_4 = arith.constant 0 : index
    %3 = vector.load %arg3[%c0_3, %c0_4] : memref<1x96xf32, #tpu.memory_space<vmem>>, vector<1x96xf32>
    %4 = vector.broadcast %3 : vector<1x96xf32> to vector<16x96xf32>
    %5 = arith.addf %2, %4 : vector<16x96xf32>
    %6 = arith.truncf %5 : vector<16x96xf32> to vector<16x96xbf16>
    %c0_5 = arith.constant 0 : index
    %c0_6 = arith.constant 0 : index
    %7 = vector.load %arg4[%c0_5, %c0_6] : memref<16x96xbf16, #tpu.memory_space<vmem>>, vector<16x96xbf16>
    tpu.vector_store %arg4[%c0_5, %c0_6], %6 {strides = array<i32>} : memref<16x96xbf16, #tpu.memory_space<vmem>>, vector<16x96xbf16>,
    return
  }
  func.func @transform_0(%arg0: i32) -> (i32, i32) {
    %c0_i32 = arith.constant 0 : i32
    %c0_i32_0 = arith.constant 0 : i32
    return %arg0, %c0_i32 : i32, i32
  }
  func.func @transform_1(%arg0: i32) -> (i32, i32) {
    %c0_i32 = arith.constant 0 : i32
    %c0_i32_0 = arith.constant 0 : i32
    %c0_i32_1 = arith.constant 0 : i32
    return %c0_i32, %c0_i32_0 : i32, i32
  }
  func.func @transform_2(%arg0: i32) -> (i32, i32) {
    %c0_i32 = arith.constant 0 : i32
    %c0_i32_0 = arith.constant 0 : i32
    %c0_i32_1 = arith.constant 0 : i32
    return %c0_i32, %c0_i32_0 : i32, i32
  }
  func.func @transform_3(%arg0: i32) -> (i32, i32) {
    %c0_i32 = arith.constant 0 : i32
    %c0_i32_0 = arith.constant 0 : i32
    return %arg0, %c0_i32 : i32, i32
  }
}

</mosaic_0001>

<bundles_post_ra>
// kernel: tpu_custom_call.1
= control target key start
LH: loop header
LB: loop body
LE: loop exit
PB: predicated region body
PF: predicated region fallthrough
CT: control target
= control target key end

     0   :  { %8 = vsyncpa [#allocation3], 0  ;;  %s264_s0 = inlined_call_operand.hbm [shape: bf16[16,32], index: 0, kind: input, shape index: {}]   ;;  %s265_s1 = inlined_call_operand.hbm [shape: bf16[32,96], index: 1, kind: input, shape index: {}]   ;;  %s266_s2 = inlined_call_operand.vmem [shape: f32[1,96], index: 2, kind: input, shape index: {}]   ;;  %s267_s3 = inlined_call_operand.hbm [shape: bf16[16,96], index: 3, kind: output, shape index: {}]  }
   0x1   :  { %9 = vsyncpa [#allocation6], 0 }
   0x2   :  { %10 = vsyncpa [#allocation4], 0  ;;  %s15_s14 = sshll.u32 %s264_s0, 4  ;;  %s218_s15 = smov [#allocation2]   ;;  %s16_s14 = int_to_ptr.hbm [resolvable:$true] %s15_s14 }
   0x3   :  { %s17_s16 = sshll.u32 %s218_s15, 4  ;;  %s28_s19 = sshll.u32 %s265_s1, 4  ;;  %s18_s16 = int_to_ptr.vmem [resolvable:$true] %s17_s16  ;;  %s29_s19 = int_to_ptr.hbm [resolvable:$true] %s28_s19 }
   0x4   :  { %s219_s20 = smov 64   ;;  %s220_s21 = smov 4  }
   0x5   :  { %23 = dma.hbm_to_vmem [thread:$0]  %s16_s14, 128, %s18_s16, [#allocation3], %s219_s20, %s219_s20, %s220_s21  }
   0x6   :  { %s221_s22 = smov [#allocation5]  }
   0x7   :  { %s30_s23 = sshll.u32 %s221_s22, 4  ;;  %s31_s23 = int_to_ptr.vmem [resolvable:$true] %s30_s23 }
   0x8   :  { %36 = dma.hbm_to_vmem [thread:$0]  %s29_s19, 256, %s31_s23, [#allocation6], %s219_s20, %s219_s20, %s220_s21  }
   0x9   :  { %212 = dma.done.wait [#allocation3], 128  }
   0xa   :  { %213 = vsyncadd [#allocation3], 4294967168 }
   0xb   :  { %214 = dma.done.wait [#allocation6], 256  }
   0xc   :  { %215 = vsyncadd [#allocation6], 4294967040  ;;  %v133_v0 = vld [vmem:[#allocation5 + $0x8] sm:$0xff]  ;;  %v132_v1 = vld [vmem:[#allocation5] sm:$0xff]  ;;  %vm75_vm0 = vcmask 261120   ;;  %vm95_vm1 = vcmask 781312  }
   0xd   :  { %85 = vmatpush.bf16.msra.mxu0 %v133_v0  ;;  %v131_v2 = vld [vmem:[#allocation2] sm:$0xff]  ;;  %s222_s24 = smov [#allocation7]   ;;  %s104_s28 = sshll.u32 %s267_s3, 4  ;;  %s105_s28 = int_to_ptr.hbm [resolvable:$true] %s104_s28 }
   0xe   :  { %v139_v3 = vld [vmem:[%s266_s2] ss:$0 sm:$0xff]  ;;  %s102_s25 = sshll.u32 %s222_s24, 4  ;;  %s103_s25 = int_to_ptr.vmem [resolvable:$true] %s102_s25 }
  0x11   :  { %86 = vmatpush.bf16.msra.mxu0 %v132_v1 }
  0x14   :  { %130 = vmatmul.msk.bf16.vlgmr.msra.gmra.mxu0 %vm75_vm0, %v131_v2 }
  0x91   :  { %v88_v4 = vpop.f32.mrf.mxu0 }
  0x92   :  { %v89_v5 = vadd.f32 %v139_v3, %v88_v4 }
  0x94   :  { %v93_v6 = vpack.c.bf16 %v89_v5, %v89_v5 }
  0x96   :  { %96 = vst.msk [vmem:[#allocation7] sm:$0xf] %vm95_vm1, %v93_v6 }
  0x99   :  { %v90_v7 = vpop.f32.mrf.mxu0 }
  0x9a   :  { %v91_v8 = vadd.f32 %v139_v3, %v90_v7 }
  0x9c   :  { %v94_v9 = vpack.c.bf16 %v91_v8, %v91_v8 }
  0x9e   :  { %97 = vst.msk [vmem:[#allocation7 + $0x4] sm:$0xf] %vm95_vm1, %v94_v9 }
  0x9f   :  { %110 = dma.vmem_to_hbm [thread:$0]  %s103_s25, 128, %s105_s28, [#allocation4], %s219_s20, %s219_s20, %s220_s21  }
  0xa0   :  { %216 = dma.done.wait [#allocation4], 128  }
  0xa1   :  { %217 = vsyncadd [#allocation4], 4294967168 }
  0xa2   :  { %115 = vsyncpa [#allocation3], 1 }
  0xa3   :  { %116 = vsyncpa [#allocation6], 1 }
  0xa4   :  { %117 = vsyncpa [#allocation4], 1 }

</bundles_post_ra>
